<compile_context>
chip_gen: v7x
topology: tpu7x:2x2x1
jax: 0.10.0
libtpu: 0.0.40
codegen_flags: <defaults>
</compile_context>

<pallas_src>
import jax
import jax.numpy as jnp
from jax.experimental import pallas as pl
from jax.experimental.pallas import tpu as pltpu

D_IN = 50          # encoder input / output features
D_HID = 50         # decoder_1 output features
D_OUT = 3          # decoder_2 output features
D_OUT_PAD = 8      # decoder_2 padded to 8 lanes -> 32 B/row f32 writeback


def ednet_kernel(x1_ref, x2_ref, w1_ref, b1_ref, w2_ref, b2_ref,
                 wd1a_ref, wd1b_ref, bd1_ref, wd2_ref, bd2_ref, o_ref):
    # Encoders (f32 MXU, f32 accumulate), bias + ReLU on the VPU.
    l1 = jnp.maximum(
        jnp.dot(x1_ref[...], w1_ref[...], preferred_element_type=jnp.float32)
        + b1_ref[...], 0.0)
    l2 = jnp.maximum(
        jnp.dot(x2_ref[...], w2_ref[...], preferred_element_type=jnp.float32)
        + b2_ref[...], 0.0)

    # decoder_1 on the "concatenated" latent, expressed with split weight
    # halves so the concat never materializes (no xcat anywhere).
    h = (jnp.dot(l1, wd1a_ref[...], preferred_element_type=jnp.float32)
         + jnp.dot(l2, wd1b_ref[...], preferred_element_type=jnp.float32)
         + bd1_ref[...])
    h = jnp.maximum(h, 0.0)

    # decoder_2, padded to 8 output lanes.
    o = jnp.dot(h, wd2_ref[...], preferred_element_type=jnp.float32) + bd2_ref[...]
    o_ref[...] = o.astype(o_ref.dtype)


def _round_up(x, m):
    return (x + m - 1) // m * m


def _num_tensorcores():
    """Best-effort TensorCore count (2 on v7x, 1 on v5e/v6e)."""
    try:
        info = pltpu.get_tpu_info()
        for attr in ("num_tensorcores", "tensorcores_per_chip",
                     "cores_per_chip", "num_cores"):
            v = getattr(info, attr, None)
            if isinstance(v, int) and v > 0:
                return v
    except Exception:
        pass
    return 1


def prepare_params(params):
    """One-time weight prep into the exact layout the kernel consumes.

    Call once (e.g. next to init_params); keeps the per-call graph to just
    the pallas_call plus the final [:, :3] slice.
    """
    wd2 = jnp.zeros((D_HID, D_OUT_PAD), jnp.float32)
    wd2 = wd2.at[:, :D_OUT].set(params["wd2"])
    bd2 = jnp.zeros((1, D_OUT_PAD), jnp.float32)
    bd2 = bd2.at[:, :D_OUT].set(params["bd2"])
    return {
        "w1": params["w1"].astype(jnp.float32),     # (50, 50)
        "b1": params["b1"].astype(jnp.float32),     # (1, 50)
        "w2": params["w2"].astype(jnp.float32),
        "b2": params["b2"].astype(jnp.float32),
        "wd1a": params["wd1"][:D_IN].astype(jnp.float32),   # (50, 50)
        "wd1b": params["wd1"][D_IN:].astype(jnp.float32),   # (50, 50)
        "bd1": params["bd1"].astype(jnp.float32),            # (1, 50)
        "wd2": wd2,                                          # (50, 8)
        "bd2": bd2,                                          # (1, 8)
    }


def ednet_forward(x1, x2, kparams, *, bm=4096):
    """x1, x2: (B, 50) float32.  kparams: output of prepare_params()."""
    B = x1.shape[0]

    # Batch tile: multiple of 8 sublanes (f32); big enough to amortize the
    # ~0.35us per-grid-step overhead, never bigger than the (rounded) batch.
    bm_eff = max(8, min(int(bm), _round_up(B, 8)))
    bm_eff = _round_up(bm_eff, 8)

    # Only split into multiple grid steps when there are multiple
    # TensorCores (v7x) to feed; on single-TC v5e/v6e the grid is a serial
    # loop and splitting only adds per-step overhead.
    ntc = _num_tensorcores()
    while ntc >= 2 and pl.cdiv(B, bm_eff) < ntc and bm_eff >= 512:
        bm_eff = _round_up(bm_eff // 2, 8)

    grid = pl.cdiv(B, bm_eff)   # ragged last tile handled by Pallas masking

    x_spec = pl.BlockSpec((bm_eff, D_IN), lambda i: (i, 0))

    def full(a):
        return pl.BlockSpec(a.shape, lambda i: (0,) * a.ndim)

    weight_bytes = 4 * sum(int(v.size) for v in kparams.values())
    flops = 2 * B * (D_IN * D_IN            # encoder_1
                     + D_IN * D_IN          # encoder_2
                     + 2 * D_IN * D_HID     # decoder_1 (two halves)
                     + D_HID * D_OUT_PAD)   # decoder_2
    bytes_accessed = B * (2 * D_IN * 4 + D_OUT_PAD * 4) + weight_bytes

    out = pl.pallas_call(
        ednet_kernel,
        out_shape=jax.ShapeDtypeStruct((B, D_OUT_PAD), jnp.float32),
        grid=(grid,),
        in_specs=[
            x_spec, x_spec,
            full(kparams["w1"]), full(kparams["b1"]),
            full(kparams["w2"]), full(kparams["b2"]),
            full(kparams["wd1a"]), full(kparams["wd1b"]), full(kparams["bd1"]),
            full(kparams["wd2"]), full(kparams["bd2"]),
        ],
        out_specs=pl.BlockSpec((bm_eff, D_OUT_PAD), lambda i: (i, 0)),
        compiler_params=pltpu.CompilerParams(
            dimension_semantics=("parallel",)),
        cost_estimate=pl.CostEstimate(
            flops=flops, transcendentals=0, bytes_accessed=bytes_accessed),
    )(x1, x2,
      kparams["w1"], kparams["b1"], kparams["w2"], kparams["b2"],
      kparams["wd1a"], kparams["wd1b"], kparams["bd1"],
      kparams["wd2"], kparams["bd2"])

    return out[:, :D_OUT]


def init_params(key):
    """Deterministic synthetic parameters with the shapes implied by EDNet.

    PyTorch Linear stores weight as (out, in); here weights are kept
    pre-transposed as (in, out) so the math is x @ W + b.
    """
    ks = jax.random.split(key, 8)
    s = 0.1
    return {
        "w1": s * jax.random.normal(ks[0], (D_IN, D_IN), jnp.float32),
        "b1": s * jax.random.normal(ks[1], (1, D_IN), jnp.float32),
        "w2": s * jax.random.normal(ks[2], (D_IN, D_IN), jnp.float32),
        "b2": s * jax.random.normal(ks[3], (1, D_IN), jnp.float32),
        "wd1": s * jax.random.normal(ks[4], (2 * D_IN, D_HID), jnp.float32),
        "bd1": s * jax.random.normal(ks[5], (1, D_HID), jnp.float32),
        "wd2": s * jax.random.normal(ks[6], (D_HID, D_OUT), jnp.float32),
        "bd2": s * jax.random.normal(ks[7], (1, D_OUT), jnp.float32),
    }


def ednet_reference(x1, x2, params):
    """Plain-JAX f32 reference matching the PyTorch forward exactly."""
    l1 = jax.nn.relu(x1 @ params["w1"] + params["b1"])
    l2 = jax.nn.relu(x2 @ params["w2"] + params["b2"])
    cat = jnp.concatenate([l1, l2], axis=1)
    h = jax.nn.relu(cat @ params["wd1"] + params["bd1"])
    return h @ params["wd2"] + params["bd2"]


if __name__ == "__main__":
    key = jax.random.PRNGKey(0)
    k_p, k_x1, k_x2 = jax.random.split(key, 3)

    B = 128
    params = init_params(k_p)
    kparams = prepare_params(params)          # one-time weight prep
    x1 = jax.random.normal(k_x1, (B, D_IN), jnp.float32)
    x2 = jax.random.normal(k_x2, (B, D_IN), jnp.float32)

    out = jax.block_until_ready(ednet_forward(x1, x2, kparams))

    ref = ednet_reference(x1, x2, params)
    assert out.shape == (B, D_OUT)
    # f32 data end-to-end; MXU default precision may still round internally.
    assert jnp.allclose(out, ref, atol=3e-2, rtol=3e-2), \
        float(jnp.max(jnp.abs(out - ref)))

    print("KERNEL_OK")
</pallas_src>

<mosaic_0001>
module attributes {stable_mosaic.version = 11 : i64} {
  func.func @ednet_kernel(%arg0: i32, %arg1: memref<128x50xf32, #tpu.memory_space<vmem>>, %arg2: memref<128x50xf32, #tpu.memory_space<vmem>>, %arg3: memref<50x50xf32, #tpu.memory_space<vmem>>, %arg4: memref<1x50xf32, #tpu.memory_space<vmem>>, %arg5: memref<50x50xf32, #tpu.memory_space<vmem>>, %arg6: memref<1x50xf32, #tpu.memory_space<vmem>>, %arg7: memref<50x50xf32, #tpu.memory_space<vmem>>, %arg8: memref<50x50xf32, #tpu.memory_space<vmem>>, %arg9: memref<1x50xf32, #tpu.memory_space<vmem>>, %arg10: memref<50x8xf32, #tpu.memory_space<vmem>>, %arg11: memref<1x8xf32, #tpu.memory_space<vmem>>, %arg12: memref<128x8xf32, #tpu.memory_space<vmem>>) attributes {dimension_semantics = [#tpu.dimension_semantics<parallel>], iteration_bounds = array<i64: 1>, scalar_prefetch = 0 : i64, scratch_operands = 0 : i64, tpu.core_type = #tpu.core_type<tc>, window_params = [{transform_indices = @transform_0, window_bounds = array<i64: 128, 50>}, {transform_indices = @transform_1, window_bounds = array<i64: 128, 50>}, {pipeline_mode = #tpu.pipeline_mode<synchronous>, transform_indices = @transform_2, window_bounds = array<i64: 50, 50>}, {pipeline_mode = #tpu.pipeline_mode<synchronous>, transform_indices = @transform_3, window_bounds = array<i64: 1, 50>}, {pipeline_mode = #tpu.pipeline_mode<synchronous>, transform_indices = @transform_4, window_bounds = array<i64: 50, 50>}, {pipeline_mode = #tpu.pipeline_mode<synchronous>, transform_indices = @transform_5, window_bounds = array<i64: 1, 50>}, {pipeline_mode = #tpu.pipeline_mode<synchronous>, transform_indices = @transform_6, window_bounds = array<i64: 50, 50>}, {pipeline_mode = #tpu.pipeline_mode<synchronous>, transform_indices = @transform_7, window_bounds = array<i64: 50, 50>}, {pipeline_mode = #tpu.pipeline_mode<synchronous>, transform_indices = @transform_8, window_bounds = array<i64: 1, 50>}, {pipeline_mode = #tpu.pipeline_mode<synchronous>, transform_indices = @transform_9, window_bounds = array<i64: 50, 8>}, {pipeline_mode = #tpu.pipeline_mode<synchronous>, transform_indices = @transform_10, window_bounds = array<i64: 1, 8>}, {transform_indices = @transform_11, window_bounds = array<i64: 128, 8>}]} {
    %c0 = arith.constant 0 : index
    %c0_0 = arith.constant 0 : index
    %0 = vector.load %arg1[%c0, %c0_0] : memref<128x50xf32, #tpu.memory_space<vmem>>, vector<128x50xf32>
    %c0_1 = arith.constant 0 : index
    %c0_2 = arith.constant 0 : index
    %1 = vector.load %arg3[%c0_1, %c0_2] : memref<50x50xf32, #tpu.memory_space<vmem>>, vector<50x50xf32>
    %cst = arith.constant dense<0.000000e+00> : vector<128x50xf32>
    %2 = tpu.matmul %0, %1, %cst {dimension_numbers = #tpu.dot_dimension_numbers<[1], [0], [0], [1], [0, 0, 1, 1], [], []>} : vector<128x50xf32>, vector<50x50xf32>, vector<128x50xf32> -> vector<128x50xf32>
    %c0_3 = arith.constant 0 : index
    %c0_4 = arith.constant 0 : index
    %3 = vector.load %arg4[%c0_3, %c0_4] : memref<1x50xf32, #tpu.memory_space<vmem>>, vector<1x50xf32>
    %4 = vector.broadcast %3 : vector<1x50xf32> to vector<128x50xf32>
    %5 = arith.addf %2, %4 : vector<128x50xf32>
    %cst_5 = arith.constant 0.000000e+00 : f32
    %6 = vector.broadcast %cst_5 : f32 to vector<128x50xf32>
    %7 = arith.maximumf %5, %6 : vector<128x50xf32>
    %c0_6 = arith.constant 0 : index
    %c0_7 = arith.constant 0 : index
    %8 = vector.load %arg2[%c0_6, %c0_7] : memref<128x50xf32, #tpu.memory_space<vmem>>, vector<128x50xf32>
    %c0_8 = arith.constant 0 : index
    %c0_9 = arith.constant 0 : index
    %9 = vector.load %arg5[%c0_8, %c0_9] : memref<50x50xf32, #tpu.memory_space<vmem>>, vector<50x50xf32>
    %cst_10 = arith.constant dense<0.000000e+00> : vector<128x50xf32>
    %10 = tpu.matmul %8, %9, %cst_10 {dimension_numbers = #tpu.dot_dimension_numbers<[1], [0], [0], [1], [0, 0, 1, 1], [], []>} : vector<128x50xf32>, vector<50x50xf32>, vector<128x50xf32> -> vector<128x50xf32>
    %c0_11 = arith.constant 0 : index
    %c0_12 = arith.constant 0 : index
    %11 = vector.load %arg6[%c0_11, %c0_12] : memref<1x50xf32, #tpu.memory_space<vmem>>, vector<1x50xf32>
    %12 = vector.broadcast %11 : vector<1x50xf32> to vector<128x50xf32>
    %13 = arith.addf %10, %12 : vector<128x50xf32>
    %cst_13 = arith.constant 0.000000e+00 : f32
    %14 = vector.broadcast %cst_13 : f32 to vector<128x50xf32>
    %15 = arith.maximumf %13, %14 : vector<128x50xf32>
    %c0_14 = arith.constant 0 : index
    %c0_15 = arith.constant 0 : index
    %16 = vector.load %arg7[%c0_14, %c0_15] : memref<50x50xf32, #tpu.memory_space<vmem>>, vector<50x50xf32>
    %cst_16 = arith.constant dense<0.000000e+00> : vector<128x50xf32>
    %17 = tpu.matmul %7, %16, %cst_16 {dimension_numbers = #tpu.dot_dimension_numbers<[1], [0], [0], [1], [0, 0, 1, 1], [], []>} : vector<128x50xf32>, vector<50x50xf32>, vector<128x50xf32> -> vector<128x50xf32>
    %c0_17 = arith.constant 0 : index
    %c0_18 = arith.constant 0 : index
    %18 = vector.load %arg8[%c0_17, %c0_18] : memref<50x50xf32, #tpu.memory_space<vmem>>, vector<50x50xf32>
    %cst_19 = arith.constant dense<0.000000e+00> : vector<128x50xf32>
    %19 = tpu.matmul %15, %18, %cst_19 {dimension_numbers = #tpu.dot_dimension_numbers<[1], [0], [0], [1], [0, 0, 1, 1], [], []>} : vector<128x50xf32>, vector<50x50xf32>, vector<128x50xf32> -> vector<128x50xf32>
    %20 = arith.addf %17, %19 : vector<128x50xf32>
    %c0_20 = arith.constant 0 : index
    %c0_21 = arith.constant 0 : index
    %21 = vector.load %arg9[%c0_20, %c0_21] : memref<1x50xf32, #tpu.memory_space<vmem>>, vector<1x50xf32>
    %22 = vector.broadcast %21 : vector<1x50xf32> to vector<128x50xf32>
    %23 = arith.addf %20, %22 : vector<128x50xf32>
    %cst_22 = arith.constant 0.000000e+00 : f32
    %24 = vector.broadcast %cst_22 : f32 to vector<128x50xf32>
    %25 = arith.maximumf %23, %24 : vector<128x50xf32>
    %c0_23 = arith.constant 0 : index
    %c0_24 = arith.constant 0 : index
    %26 = vector.load %arg10[%c0_23, %c0_24] : memref<50x8xf32, #tpu.memory_space<vmem>>, vector<50x8xf32>
    %cst_25 = arith.constant dense<0.000000e+00> : vector<128x8xf32>
    %27 = tpu.matmul %25, %26, %cst_25 {dimension_numbers = #tpu.dot_dimension_numbers<[1], [0], [0], [1], [0, 0, 1, 1], [], []>} : vector<128x50xf32>, vector<50x8xf32>, vector<128x8xf32> -> vector<128x8xf32>
    %c0_26 = arith.constant 0 : index
    %c0_27 = arith.constant 0 : index
    %28 = vector.load %arg11[%c0_26, %c0_27] : memref<1x8xf32, #tpu.memory_space<vmem>>, vector<1x8xf32>
    %29 = vector.broadcast %28 : vector<1x8xf32> to vector<128x8xf32>
    %30 = arith.addf %27, %29 : vector<128x8xf32>
    %c0_28 = arith.constant 0 : index
    %c0_29 = arith.constant 0 : index
    %31 = vector.load %arg12[%c0_28, %c0_29] : memref<128x8xf32, #tpu.memory_space<vmem>>, vector<128x8xf32>
    tpu.vector_store %arg12[%c0_28, %c0_29], %30 {strides = array<i32>} : memref<128x8xf32, #tpu.memory_space<vmem>>, vector<128x8xf32>,
    return
  }
  func.func @transform_0(%arg0: i32) -> (i32, i32) {
    %c0_i32 = arith.constant 0 : i32
    %c0_i32_0 = arith.constant 0 : i32
    return %arg0, %c0_i32 : i32, i32
  }
  func.func @transform_1(%arg0: i32) -> (i32, i32) {
    %c0_i32 = arith.constant 0 : i32
    %c0_i32_0 = arith.constant 0 : i32
    return %arg0, %c0_i32 : i32, i32
  }
  func.func @transform_2(%arg0: i32) -> (i32, i32) {
    %c0_i32 = arith.constant 0 : i32
    %c0_i32_0 = arith.constant 0 : i32
    %c0_i32_1 = arith.constant 0 : i32
    return %c0_i32, %c0_i32_0 : i32, i32
  }
  func.func @transform_3(%arg0: i32) -> (i32, i32) {
    %c0_i32 = arith.constant 0 : i32
    %c0_i32_0 = arith.constant 0 : i32
    %c0_i32_1 = arith.constant 0 : i32
    return %c0_i32, %c0_i32_0 : i32, i32
  }
  func.func @transform_4(%arg0: i32) -> (i32, i32) {
    %c0_i32 = arith.constant 0 : i32
    %c0_i32_0 = arith.constant 0 : i32
    %c0_i32_1 = arith.constant 0 : i32
    return %c0_i32, %c0_i32_0 : i32, i32
  }
  func.func @transform_5(%arg0: i32) -> (i32, i32) {
    %c0_i32 = arith.constant 0 : i32
    %c0_i32_0 = arith.constant 0 : i32
    %c0_i32_1 = arith.constant 0 : i32
    return %c0_i32, %c0_i32_0 : i32, i32
  }
  func.func @transform_6(%arg0: i32) -> (i32, i32) {
    %c0_i32 = arith.constant 0 : i32
    %c0_i32_0 = arith.constant 0 : i32
    %c0_i32_1 = arith.constant 0 : i32
    return %c0_i32, %c0_i32_0 : i32, i32
  }
  func.func @transform_7(%arg0: i32) -> (i32, i32) {
    %c0_i32 = arith.constant 0 : i32
    %c0_i32_0 = arith.constant 0 : i32
    %c0_i32_1 = arith.constant 0 : i32
    return %c0_i32, %c0_i32_0 : i32, i32
  }
  func.func @transform_8(%arg0: i32) -> (i32, i32) {
    %c0_i32 = arith.constant 0 : i32
    %c0_i32_0 = arith.constant 0 : i32
    %c0_i32_1 = arith.constant 0 : i32
    return %c0_i32, %c0_i32_0 : i32, i32
  }
  func.func @transform_9(%arg0: i32) -> (i32, i32) {
    %c0_i32 = arith.constant 0 : i32
    %c0_i32_0 = arith.constant 0 : i32
    %c0_i32_1 = arith.constant 0 : i32
    return %c0_i32, %c0_i32_0 : i32, i32
  }
  func.func @transform_10(%arg0: i32) -> (i32, i32) {
    %c0_i32 = arith.constant 0 : i32
    %c0_i32_0 = arith.constant 0 : i32
    %c0_i32_1 = arith.constant 0 : i32
    return %c0_i32, %c0_i32_0 : i32, i32
  }
  func.func @transform_11(%arg0: i32) -> (i32, i32) {
    %c0_i32 = arith.constant 0 : i32
    %c0_i32_0 = arith.constant 0 : i32
    return %arg0, %c0_i32 : i32, i32
  }
}

</mosaic_0001>

<bundles_post_ra>
// kernel: tpu_custom_call.1
= control target key start
LH: loop header
LB: loop body
LE: loop exit
PB: predicated region body
PF: predicated region fallthrough
CT: control target
= control target key end

     0   :  { %vm68_vm0 = vcmask 408576   ;;  %vm117_vm1 = vcmask 1041408   ;;  %vm1179_vm2 = vcmask 64512   ;;  %s2173_s2 = inlined_call_operand.vmem [shape: f32[50,50], index: 2, kind: input, shape index: {}]   ;;  %s2174_s0 = inlined_call_operand.vmem [shape: f32[128,50], index: 0, kind: input, shape index: {}]   ;;  %s2175_s4 = inlined_call_operand.vmem [shape: f32[50,50], index: 4, kind: input, shape index: {}]   ;;  %s2176_s1 = inlined_call_operand.vmem [shape: f32[128,50], index: 1, kind: input, shape index: {}]   ;;  %s2177_s7 = inlined_call_operand.vmem [shape: f32[50,50], index: 7, kind: input, shape index: {}]   ;;  %s2178_s6 = inlined_call_operand.vmem [shape: f32[50,50], index: 6, kind: input, shape index: {}]   ;;  %s2179_s9 = inlined_call_operand.vmem [shape: f32[50,8], index: 9, kind: input, shape index: {}]   ;;  %s2180_s5 = inlined_call_operand.vmem [shape: f32[1,50], index: 5, kind: input, shape index: {}]   ;;  %s2181_s3 = inlined_call_operand.vmem [shape: f32[1,50], index: 3, kind: input, shape index: {}]   ;;  %s2182_s8 = inlined_call_operand.vmem [shape: f32[1,50], index: 8, kind: input, shape index: {}]   ;;  %s2183_s10 = inlined_call_operand.vmem [shape: f32[1,8], index: 10, kind: input, shape index: {}]   ;;  %s2184_s11 = inlined_call_operand.vmem [shape: f32[128,8], index: 11, kind: output, shape index: {}]  }
   0x1   :  { %v54_v0 = vld [vmem:[%s2173_s2] sm:$0xff]  ;;  %v55_v1 = vld [vmem:[%s2173_s2 + $0x8] sm:$0xff]  ;;  %v56_v2 = vld [vmem:[%s2173_s2 + $0x10] sm:$0xff] }
   0x2   :  { %v1594_v3 = vpack.c.bf16 %v55_v1, %v54_v0  ;;  %v57_v4 = vld [vmem:[%s2173_s2 + $0x18] sm:$0xff]  ;;  %v58_v6 = vld [vmem:[%s2173_s2 + $0x20] sm:$0xff]  ;;  %v59_v7 = vld [vmem:[%s2173_s2 + $0x28] sm:$0xff] }
   0x3   :  { %v1598_v5 = vpack.c.bf16 %v57_v4, %v56_v2  ;;  %v46_v8 = vld [vmem:[%s2174_s0 + $0x40] sm:$0xff]  ;;  %v1602_v9 = vpack.c.bf16 %v59_v7, %v58_v6  ;;  %v60_v10 = vld [vmem:[%s2173_s2 + $0x30] sm:$0x3]  ;;  %v299_v12 = vld [vmem:[%s2175_s4 + $0x8] sm:$0xff] }
   0x4   :  { %1654 = vmatprep.subr.bf16.mxu1 %v1594_v3  ;;  %1430 = vmatprep.mubr.msk.f32.mxu1 %vm68_vm0, %v46_v8  ;;  %v298_v11 = vld [vmem:[%s2175_s4] sm:$0xff]  ;;  %v300_v13 = vld [vmem:[%s2175_s4 + $0x10] sm:$0xff]  ;;  %v301_v14 = vld [vmem:[%s2175_s4 + $0x18] sm:$0xff] }
   0x5   :  { %1658 = vmatpush3.bf16.msra.mxu1 %v1594_v3  ;;  %1595 = vmatprep.subr.bf16.mxu0 %v1594_v3  ;;  %v38_v15 = vld [vmem:[%s2174_s0] sm:$0xff]  ;;  %v1606_v16 = vpack.c.bf16 %v299_v12, %v298_v11  ;;  %v47_v17 = vld [vmem:[%s2174_s0 + $0x48] sm:$0xff]  ;;  %v48_v18 = vld [vmem:[%s2174_s0 + $0x50] sm:$0xff]  ;;  %v1610_v19 = vpack.c.bf16 %v301_v14, %v300_v13 }
   0x6   :  { %1655 = vmatprep.subr.bf16.mxu1 %v1598_v5  ;;  %1597 = vmatpush3.bf16.msra.mxu0 %v1594_v3  ;;  %v302_v20 = vld [vmem:[%s2175_s4 + $0x20] sm:$0xff]  ;;  %v303_v21 = vld [vmem:[%s2175_s4 + $0x28] sm:$0xff]  ;;  %v49_v23 = vld [vmem:[%s2174_s0 + $0x58] sm:$0xff] }
   0x7   :  { %1599 = vmatprep.subr.bf16.mxu0 %v1598_v5  ;;  %1418 = vmatprep.mubr.msk.f32.mxu0 %vm68_vm0, %v38_v15  ;;  %v39_v22 = vld [vmem:[%s2174_s0 + $0x8] sm:$0xff]  ;;  %v40_v24 = vld [vmem:[%s2174_s0 + $0x10] sm:$0xff]  ;;  %v50_v25 = vld [vmem:[%s2174_s0 + $0x60] sm:$0xff]  ;;  %v1614_v26 = vpack.c.bf16 %v303_v21, %v302_v20 }
   0x8   :  { %v41_v27 = vld [vmem:[%s2174_s0 + $0x18] sm:$0xff]  ;;  %v51_v28 = vld [vmem:[%s2174_s0 + $0x68] sm:$0xff]  ;;  %v42_v29 = vld [vmem:[%s2174_s0 + $0x20] sm:$0xff] }
   0x9   :  { %1659 = vmatpush3.bf16.msra.mxu1 %v1598_v5  ;;  %v52_v30 = vld [vmem:[%s2174_s0 + $0x70] sm:$0xff]  ;;  %v43_v32 = vld [vmem:[%s2174_s0 + $0x28] sm:$0xff]  ;;  %v53_v33 = vld [vmem:[%s2174_s0 + $0x78] sm:$0xff] }
   0xa   :  { %1656 = vmatprep.subr.bf16.mxu1 %v1602_v9  ;;  %1601 = vmatpush3.bf16.msra.mxu0 %v1598_v5  ;;  %v304_v31 = vld [vmem:[%s2175_s4 + $0x30] sm:$0x3]  ;;  %v282_v35 = vld [vmem:[%s2176_s1] sm:$0xff]  ;;  %v45_v36 = vld [vmem:[%s2174_s0 + $0x38] sm:$0xff] }
   0xb   :  { %1603 = vmatprep.subr.bf16.mxu0 %v1602_v9  ;;  %v44_v34 = vld [vmem:[%s2174_s0 + $0x30] sm:$0xff]  ;;  %v283_v37 = vld [vmem:[%s2176_s1 + $0x8] sm:$0xff]  ;;  %v285_v39 = vld [vmem:[%s2176_s1 + $0x18] sm:$0xff] }
   0xc   :  { %v284_v38 = vld [vmem:[%s2176_s1 + $0x10] sm:$0xff]  ;;  %v286_v40 = vld [vmem:[%s2176_s1 + $0x20] sm:$0xff]  ;;  %v287_v41 = vld [vmem:[%s2176_s1 + $0x28] sm:$0xff] }
   0xd   :  { %1660 = vmatpush3.bf16.msra.mxu1 %v1602_v9  ;;  %v288_v42 = vld [vmem:[%s2176_s1 + $0x30] sm:$0xff]  ;;  %v289_v43 = vld [vmem:[%s2176_s1 + $0x38] sm:$0xff]  ;;  %v290_v44 = vld [vmem:[%s2176_s1 + $0x40] sm:$0xff] }
   0xe   :  { %1657 = vmatprep.subr.msk.mxu1 %vm117_vm1, %v60_v10  ;;  %1605 = vmatpush3.bf16.msra.mxu0 %v1602_v9  ;;  %v291_v45 = vld [vmem:[%s2176_s1 + $0x48] sm:$0xff]  ;;  %v292_v46 = vld [vmem:[%s2176_s1 + $0x50] sm:$0xff]  ;;  %v293_v47 = vld [vmem:[%s2176_s1 + $0x58] sm:$0xff] }
   0xf   :  { %1416 = vmatprep.subr.msk.mxu0 %vm117_vm1, %v60_v10  ;;  %v294_v48 = vld [vmem:[%s2176_s1 + $0x60] sm:$0xff]  ;;  %v295_v49 = vld [vmem:[%s2176_s1 + $0x68] sm:$0xff]  ;;  %v296_v50 = vld [vmem:[%s2176_s1 + $0x70] sm:$0xff] }
  0x10   :  { %v297_v51 = vld [vmem:[%s2176_s1 + $0x78] sm:$0xff]  ;;  %v531_v52 = vld [vmem:[%s2177_s7] sm:$0xff]  ;;  %v532_v53 = vld [vmem:[%s2177_s7 + $0x8] sm:$0xff] }
  0x11   :  { %1661 = vmatpush3.msk.msra.mxu1 %vm117_vm1, %v60_v10  ;;  %v1618_v54 = vpack.c.bf16 %v532_v53, %v531_v52  ;;  %v533_v55 = vld [vmem:[%s2177_s7 + $0x10] sm:$0xff]  ;;  %v534_v56 = vld [vmem:[%s2177_s7 + $0x18] sm:$0xff]  ;;  %v535_v58 = vld [vmem:[%s2177_s7 + $0x20] sm:$0xff] }
  0x12   :  { %1431 = vmatmul.mubr.msk.f32.vlgmr.msra.gmra.mrb[0].mxu1 %vm68_vm0, %v47_v17  ;;  %1607 = vmatprep.subr.bf16.mxu1 %v1606_v16  ;;  %v1622_v57 = vpack.c.bf16 %v534_v56, %v533_v55  ;;  %v536_v59 = vld [vmem:[%s2177_s7 + $0x28] sm:$0xff]  ;;  %v537_v61 = vld [vmem:[%s2177_s7 + $0x30] sm:$0x3]  ;;  %v524_v62 = vld [vmem:[%s2178_s6] sm:$0xff] }
  0x13   :  { %1609 = vmatpush3.bf16.msra.mxu1 %v1606_v16  ;;  %1433 = vmatprep.mubr.msk.f32.mxu1 %vm68_vm0, %v48_v18  ;;  %v1626_v60 = vpack.c.bf16 %v536_v59, %v535_v58  ;;  %v525_v63 = vld [vmem:[%s2178_s6 + $0x8] sm:$0xff]  ;;  %v969_v1 = vld [vmem:[%s2179_s9] sm:$0xff]  ;;  %v971_v3 = vld [vmem:[%s2179_s9 + $0x10] sm:$0xff] }
  0x14   :  { %1611 = vmatprep.subr.bf16.mxu1 %v1610_v19  ;;  %1417 = vmatpush3.msk.msra.mxu0 %vm117_vm1, %v60_v10  ;;  %v1630_v0 = vpack.c.bf16 %v525_v63, %v524_v62  ;;  %v970_v2 = vld [vmem:[%s2179_s9 + $0x8] sm:$0xff]  ;;  %v972_v5 = vld [vmem:[%s2179_s9 + $0x18] sm:$0xff]  ;;  %v973_v7 = vld [vmem:[%s2179_s9 + $0x20] sm:$0xff] }
  0x15   :  { %1419 = vmatmul.mubr.msk.f32.vlgmr.msra.gmra.mrb[0].mxu0 %vm68_vm0, %v39_v22  ;;  %1619 = vmatprep.subr.bf16.mxu0 %v1618_v54  ;;  %v1642_v4 = vpack.c.bf16 %v970_v2, %v969_v1  ;;  %v1646_v6 = vpack.c.bf16 %v972_v5, %v971_v3  ;;  %v974_v8 = vld [vmem:[%s2179_s9 + $0x28] sm:$0xff]  ;;  %v975_v10 = vld [vmem:[%s2179_s9 + $0x30] sm:$0x3] }
  0x16   :  { %1434 = vmatmul.mubr.msk.f32.gmra.mrb[2].mxu1 %vm68_vm0, %v49_v23  ;;  %1421 = vmatprep.mubr.msk.f32.mxu0 %vm68_vm0, %v40_v24  ;;  %v1650_v9 = vpack.c.bf16 %v974_v8, %v973_v7  ;;  %v530_v56 = vld [vmem:[%s2178_s6 + $0x30] sm:$0x3] }
  0x17   :  { %1613 = vmatpush3.bf16.msra.mxu1 %v1610_v19  ;;  %1436 = vmatprep.mubr.msk.f32.mxu1 %vm68_vm0, %v50_v25  ;;  %v1997_v25 = vld [vmem:[%s2180_s5] ss:$0 sm:$0xff] }
  0x18   :  { %1615 = vmatprep.subr.bf16.mxu1 %v1614_v26  ;;  %1621 = vmatpush3.bf16.msra.mxu0 %v1618_v54 }
  0x19   :  { %1422 = vmatmul.mubr.msk.f32.gmra.mrb[2].mxu0 %vm68_vm0, %v41_v27  ;;  %1623 = vmatprep.subr.bf16.mxu0 %v1622_v57 }
  0x1a   :  { %1437 = vmatmul.mubr.msk.f32.gmra.mrb[4].mxu1 %vm68_vm0, %v51_v28  ;;  %1424 = vmatprep.mubr.msk.f32.mxu0 %vm68_vm0, %v42_v29 }
  0x1b   :  { %1617 = vmatpush3.bf16.msra.mxu1 %v1614_v26  ;;  %1439 = vmatprep.mubr.msk.f32.mxu1 %vm68_vm0, %v52_v30 }
  0x1c   :  { %1454 = vmatprep.subr.msk.mxu1 %vm117_vm1, %v304_v31  ;;  %1625 = vmatpush3.bf16.msra.mxu0 %v1622_v57 }
  0x1d   :  { %1425 = vmatmul.mubr.msk.f32.gmra.mrb[4].mxu0 %vm68_vm0, %v43_v32  ;;  %1627 = vmatprep.subr.bf16.mxu0 %v1626_v60  ;;  %v526_v32 = vld [vmem:[%s2178_s6 + $0x10] sm:$0xff] }
  0x1e   :  { %1440 = vmatmul.mubr.msk.f32.gmra.mrb[6].mxu1 %vm68_vm0, %v53_v33  ;;  %1427 = vmatprep.mubr.msk.f32.mxu0 %vm68_vm0, %v44_v34  ;;  %v527_v33 = vld [vmem:[%s2178_s6 + $0x18] sm:$0xff] }
  0x1f   :  { %1455 = vmatpush3.msk.msra.mxu1 %vm117_vm1, %v304_v31  ;;  %1456 = vmatprep.mubr.msk.f32.mxu1 %vm68_vm0, %v282_v35 }
  0x20   :  { %1629 = vmatpush3.bf16.msra.mxu0 %v1626_v60  ;;  %1643 = vmatprep.subr.bf16.mxu1 %v1642_v4 }
  0x21   :  { %1428 = vmatmul.mubr.msk.f32.gmra.mrb[6].mxu0 %vm68_vm0, %v45_v36  ;;  %1492 = vmatprep.subr.msk.mxu0 %vm117_vm1, %v537_v61 }
  0x22   :  { %1457 = vmatmul.mubr.msk.f32.vlgmr.msra.gmra.mrb[8].mxu1 %vm68_vm0, %v283_v37 }
  0x23   :  { %1459 = vmatprep.mubr.msk.f32.mxu1 %vm68_vm0, %v284_v38  ;;  %1645 = vmatpush3.bf16.msra.mxu1 %v1642_v4 }
  0x24   :  { %1493 = vmatpush3.msk.msra.mxu0 %vm117_vm1, %v537_v61  ;;  %1647 = vmatprep.subr.bf16.mxu1 %v1646_v6 }
  0x25   :  { %1631 = vmatprep.subr.bf16.mxu0 %v1630_v0 }
  0x26   :  { %1460 = vmatmul.mubr.msk.f32.gmra.mrb[10].mxu1 %vm68_vm0, %v285_v39  ;;  %v1634_v39 = vpack.c.bf16 %v527_v33, %v526_v32 }
  0x27   :  { %1462 = vmatprep.mubr.msk.f32.mxu1 %vm68_vm0, %v286_v40  ;;  %1649 = vmatpush3.bf16.msra.mxu1 %v1646_v6 }
  0x28   :  { %1651 = vmatprep.subr.bf16.mxu1 %v1650_v9 }
  0x2a   :  { %1463 = vmatmul.mubr.msk.f32.gmra.mrb[12].mxu1 %vm68_vm0, %v287_v41  ;;  %v528_v41 = vld [vmem:[%s2178_s6 + $0x20] sm:$0xff] }
  0x2b   :  { %1465 = vmatprep.mubr.msk.f32.mxu1 %vm68_vm0, %v288_v42  ;;  %1653 = vmatpush3.bf16.msra.mxu1 %v1650_v9  ;;  %v529_v42 = vld [vmem:[%s2178_s6 + $0x28] sm:$0xff] }
  0x2c   :  { %1568 = vmatprep.subr.msk.mxu1 %vm117_vm1, %v975_v10 }
  0x2e   :  { %1466 = vmatmul.mubr.msk.f32.gmra.mrb[14].mxu1 %vm68_vm0, %v289_v43 }
  0x2f   :  { %1468 = vmatprep.mubr.msk.f32.mxu1 %vm68_vm0, %v290_v44  ;;  %1569 = vmatpush3.msk.msra.mxu1 %vm117_vm1, %v975_v10 }
  0x32   :  { %1469 = vmatmul.mubr.msk.f32.gmra.mrb[16].mxu1 %vm68_vm0, %v291_v45 }
  0x33   :  { %1471 = vmatprep.mubr.msk.f32.mxu1 %vm68_vm0, %v292_v46 }
  0x36   :  { %1472 = vmatmul.mubr.msk.f32.gmra.mrb[18].mxu1 %vm68_vm0, %v293_v47 }
  0x37   :  { %1474 = vmatprep.mubr.msk.f32.mxu1 %vm68_vm0, %v294_v48  ;;  %v1638_v48 = vpack.c.bf16 %v529_v42, %v528_v41 }
  0x3a   :  { %1475 = vmatmul.mubr.msk.f32.gmra.mrb[20].mxu1 %vm68_vm0, %v295_v49 }
  0x3b   :  { %1477 = vmatprep.mubr.msk.f32.mxu1 %vm68_vm0, %v296_v50 }
  0x3e   :  { %1478 = vmatmul.mubr.msk.f32.gmra.mrb[22].mxu1 %vm68_vm0, %v297_v51 }
  0xe5   :  { %v1966_v11 = vpop.f32.mrb[0].mxu1 }
  0xe6   :  { %v1968_v12 = vpop.f32.mrb[1].mxu1 }
  0xe8   :  { %v1970_v13 = vpop.f32.mrb[0].mxu0 }
  0xe9   :  { %v1972_v14 = vpop.f32.mrb[2].mxu1  ;;  %v1974_v15 = vpop.f32.mrb[1].mxu0 }
  0xea   :  { %v1976_v16 = vpop.f32.mrb[3].mxu1 }
  0xec   :  { %v1978_v17 = vpop.f32.mrb[2].mxu0 }
  0xed   :  { %v1980_v18 = vpop.f32.mrb[4].mxu1  ;;  %v1982_v19 = vpop.f32.mrb[3].mxu0 }
  0xee   :  { %v1984_v20 = vpop.f32.mrb[5].mxu1 }
  0xf0   :  { %v1986_v21 = vpop.f32.mrb[4].mxu0 }
  0xf1   :  { %v1988_v22 = vpop.f32.mrb[6].mxu1  ;;  %v1990_v23 = vpop.f32.mrb[5].mxu0 }
  0xf2   :  { %v1992_v24 = vpop.f32.mrb[7].mxu1 }
  0xf4   :  { %v1999_v26 = vpop.f32.mrb[6].mxu0 }
  0xf5   :  { %v1458_v27 = vpop.f32.mrb[8].mxu1  ;;  %v2001_v28 = vpop.f32.mrb[7].mxu0 }
  0xf6   :  { %v435_v29 = vadd.f32 %v1458_v27, %v1997_v25  ;;  %v429_v30 = vpop.f32.mrb[9].mxu1  ;;  %v1200_v27 = vld [vmem:[%s2181_s3] ss:$0 sm:$0xff] }
  0xf7   :  { %v430_v31 = vadd.f32 %v1997_v25, %v429_v30  ;;  %v203_v42 = vadd.f32 %v1978_v17, %v1200_v27  ;;  %v228_v17 = vadd.f32 %v1200_v27, %v1968_v12  ;;  %v248_v12 = vadd.f32 %v1200_v27, %v1984_v20 }
  0xf8   :  { %v509_v36 = vmax.f32 %v435_v29, 0.0 }
  0xf9   :  { %v508_v34 = vmax.f32 %v430_v31, 0.0  ;;  %v1461_v35 = vpop.f32.mrb[10].mxu1  ;;  %v188_v31 = vadd.f32 %v1200_v27, %v1974_v15 }
  0xfa   :  { %v445_v37 = vadd.f32 %v1461_v35, %v1997_v25  ;;  %v439_v38 = vpop.f32.mrb[11].mxu1 }
  0xfb   :  { %v440_v40 = vadd.f32 %v1997_v25, %v439_v38  ;;  %1494 = vmatprep.mubr.msk.f32.mxu0 %vm68_vm0, %v508_v34  ;;  %v198_v38 = vadd.f32 %v1200_v27, %v1982_v19  ;;  %v218_v19 = vadd.f32 %v1200_v27, %v2001_v28 }
  0xfc   :  { %1495 = vmatmul.mubr.msk.f32.vlgmr.msra.gmra.mrb[8].mxu0 %vm68_vm0, %v509_v36  ;;  %v511_v45 = vmax.f32 %v445_v37, 0.0  ;;  %v266_v37 = vmax.f32 %v188_v31, 0.0 }
  0xfd   :  { %v510_v43 = vmax.f32 %v440_v40, 0.0  ;;  %v1464_v44 = vpop.f32.mrb[12].mxu1  ;;  %1633 = vmatpush3.bf16.msra.mxu0 %v1630_v0  ;;  %v193_v40 = vadd.f32 %v1970_v13, %v1200_v27  ;;  %v268_v15 = vmax.f32 %v198_v38, 0.0  ;;  %v269_v13 = vmax.f32 %v203_v42, 0.0 }
  0xfe   :  { %v455_v46 = vadd.f32 %v1464_v44, %v1997_v25  ;;  %v449_v47 = vpop.f32.mrb[13].mxu1  ;;  %1635 = vmatprep.subr.bf16.mxu0 %v1634_v39  ;;  %v213_v44 = vadd.f32 %v1986_v21, %v1200_v27  ;;  %v238_v21 = vadd.f32 %v1200_v27, %v1976_v16  ;;  %v258_v16 = vadd.f32 %v1200_v27, %v1992_v24 }
  0xff   :  { %v450_v49 = vadd.f32 %v1997_v25, %v449_v47  ;;  %1497 = vmatprep.mubr.msk.f32.mxu0 %vm68_vm0, %v510_v43  ;;  %v267_v41 = vmax.f32 %v193_v40, 0.0  ;;  %v233_v47 = vadd.f32 %v1966_v11, %v1200_v27  ;;  %v253_v11 = vadd.f32 %v1980_v18, %v1200_v27  ;;  %v1270_v18 = vld [vmem:[%s2182_s8] ss:$0 sm:$0xff] }
 0x100   :  { %1498 = vmatmul.mubr.msk.f32.gmra.mrb[10].mxu0 %vm68_vm0, %v511_v45  ;;  %v513_v52 = vmax.f32 %v455_v46, 0.0  ;;  %v272_v45 = vmax.f32 %v218_v19, 0.0  ;;  %v271_v46 = vmax.f32 %v213_v44, 0.0 }
 0x101   :  { %v512_v50 = vmax.f32 %v450_v49, 0.0  ;;  %v1467_v51 = vpop.f32.mrb[14].mxu1  ;;  %1637 = vmatpush3.bf16.msra.mxu0 %v1634_v39  ;;  %v275_v49 = vmax.f32 %v233_v47, 0.0 }
 0x102   :  { %v465_v53 = vadd.f32 %v1467_v51, %v1997_v25  ;;  %v459_v54 = vpop.f32.mrb[15].mxu1  ;;  %1639 = vmatprep.subr.bf16.mxu0 %v1638_v48 }
 0x103   :  { %v460_v55 = vadd.f32 %v1997_v25, %v459_v54  ;;  %1500 = vmatprep.mubr.msk.f32.mxu0 %vm68_vm0, %v512_v50  ;;  %v243_v50 = vadd.f32 %v1972_v14, %v1200_v27  ;;  %v263_v14 = vadd.f32 %v1988_v22, %v1200_v27  ;;  %v280_v54 = vmax.f32 %v258_v16, 0.0 }
 0x104   :  { %1501 = vmatmul.mubr.msk.f32.gmra.mrb[12].mxu0 %vm68_vm0, %v513_v52  ;;  %v515_v59 = vmax.f32 %v465_v53, 0.0  ;;  %v278_v52 = vmax.f32 %v248_v12, 0.0  ;;  %v279_v53 = vmax.f32 %v253_v11, 0.0 }
 0x105   :  { %v514_v57 = vmax.f32 %v460_v55, 0.0  ;;  %v1470_v58 = vpop.f32.mrb[16].mxu1  ;;  %1641 = vmatpush3.bf16.msra.mxu0 %v1638_v48  ;;  %v274_v48 = vmax.f32 %v228_v17, 0.0  ;;  %v277_v51 = vmax.f32 %v243_v50, 0.0  ;;  %v281_v20 = vmax.f32 %v263_v14, 0.0 }
 0x106   :  { %v475_v60 = vadd.f32 %v1470_v58, %v1997_v25  ;;  %v469_v61 = vpop.f32.mrb[17].mxu1  ;;  %1530 = vmatprep.subr.msk.mxu0 %vm117_vm1, %v530_v56 }
 0x107   :  { %v470_v62 = vadd.f32 %v1997_v25, %v469_v61  ;;  %1503 = vmatprep.mubr.msk.f32.mxu0 %vm68_vm0, %v514_v57 }
 0x108   :  { %1504 = vmatmul.mubr.msk.f32.gmra.mrb[14].mxu0 %vm68_vm0, %v515_v59  ;;  %v517_v1 = vmax.f32 %v475_v60, 0.0 }
 0x109   :  { %v516_v63 = vmax.f32 %v470_v62, 0.0  ;;  %v1473_v0 = vpop.f32.mrb[18].mxu1  ;;  %1531 = vmatpush3.msk.msra.mxu0 %vm117_vm1, %v530_v56 }
 0x10a   :  { %v485_v2 = vadd.f32 %v1473_v0, %v1997_v25  ;;  %v479_v3 = vpop.f32.mrb[19].mxu1 }
 0x10b   :  { %v480_v4 = vadd.f32 %v1997_v25, %v479_v3  ;;  %1506 = vmatprep.mubr.msk.f32.mxu0 %vm68_vm0, %v516_v63 }
 0x10c   :  { %1507 = vmatmul.mubr.msk.f32.gmra.mrb[16].mxu0 %vm68_vm0, %v517_v1  ;;  %v519_v7 = vmax.f32 %v485_v2, 0.0 }
 0x10d   :  { %v518_v5 = vmax.f32 %v480_v4, 0.0  ;;  %v1476_v6 = vpop.f32.mrb[20].mxu1 }
 0x10e   :  { %v495_v8 = vadd.f32 %v1476_v6, %v1997_v25  ;;  %v489_v9 = vpop.f32.mrb[21].mxu1 }
 0x10f   :  { %v490_v10 = vadd.f32 %v1997_v25, %v489_v9  ;;  %1509 = vmatprep.mubr.msk.f32.mxu0 %vm68_vm0, %v518_v5 }
 0x110   :  { %1510 = vmatmul.mubr.msk.f32.gmra.mrb[18].mxu0 %vm68_vm0, %v519_v7  ;;  %v521_v32 = vmax.f32 %v495_v8, 0.0 }
 0x111   :  { %v520_v29 = vmax.f32 %v490_v10, 0.0  ;;  %v1479_v30 = vpop.f32.mrb[22].mxu1 }
 0x112   :  { %v505_v33 = vadd.f32 %v1479_v30, %v1997_v25  ;;  %v499_v34 = vpop.f32.mrb[23].mxu1 }
 0x113   :  { %v500_v35 = vadd.f32 %v1997_v25, %v499_v34  ;;  %1512 = vmatprep.mubr.msk.f32.mxu0 %vm68_vm0, %v520_v29  ;;  %v208_v25 = vadd.f32 %v1200_v27, %v1990_v23  ;;  %v223_v23 = vadd.f32 %v1999_v26, %v1200_v27  ;;  %v276_v26 = vmax.f32 %v238_v21, 0.0 }
 0x114   :  { %1513 = vmatmul.mubr.msk.f32.gmra.mrb[20].mxu0 %vm68_vm0, %v521_v32  ;;  %v523_v39 = vmax.f32 %v505_v33, 0.0 }
 0x115   :  { %v522_v36 = vmax.f32 %v500_v35, 0.0  ;;  %v270_v43 = vmax.f32 %v208_v25, 0.0  ;;  %v273_v28 = vmax.f32 %v223_v23, 0.0 }
 0x117   :  { %1515 = vmatprep.mubr.msk.f32.mxu0 %vm68_vm0, %v522_v36 }
 0x118   :  { %1516 = vmatmul.mubr.msk.f32.gmra.mrb[22].mxu0 %vm68_vm0, %v523_v39 }
 0x119   :  { %1532 = vmatprep.mubr.msk.f32.mxu0 %vm68_vm0, %v266_v37 }
 0x11c   :  { %1533 = vmatmul.mubr.msk.f32.vlgmr.msra.gmra.mrb[8].mxu0 %vm68_vm0, %v267_v41 }
 0x11d   :  { %1535 = vmatprep.mubr.msk.f32.mxu0 %vm68_vm0, %v268_v15 }
 0x120   :  { %1536 = vmatmul.mubr.msk.f32.gmra.mrb[10].mxu0 %vm68_vm0, %v269_v13 }
 0x121   :  { %1538 = vmatprep.mubr.msk.f32.mxu0 %vm68_vm0, %v270_v43 }
 0x124   :  { %1539 = vmatmul.mubr.msk.f32.gmra.mrb[12].mxu0 %vm68_vm0, %v271_v46 }
 0x125   :  { %1541 = vmatprep.mubr.msk.f32.mxu0 %vm68_vm0, %v272_v45 }
 0x128   :  { %1542 = vmatmul.mubr.msk.f32.gmra.mrb[14].mxu0 %vm68_vm0, %v273_v28  ;;  %v1271_v28 = vld [vmem:[%s2183_s10] ss:$0 sm:$0xff] }
 0x129   :  { %1544 = vmatprep.mubr.msk.f32.mxu0 %vm68_vm0, %v274_v48 }
 0x12c   :  { %1545 = vmatmul.mubr.msk.f32.gmra.mrb[16].mxu0 %vm68_vm0, %v275_v49 }
 0x12d   :  { %1547 = vmatprep.mubr.msk.f32.mxu0 %vm68_vm0, %v276_v26 }
 0x130   :  { %1548 = vmatmul.mubr.msk.f32.gmra.mrb[18].mxu0 %vm68_vm0, %v277_v51 }
 0x131   :  { %1550 = vmatprep.mubr.msk.f32.mxu0 %vm68_vm0, %v278_v52 }
 0x134   :  { %1551 = vmatmul.mubr.msk.f32.gmra.mrb[20].mxu0 %vm68_vm0, %v279_v53 }
 0x135   :  { %1553 = vmatprep.mubr.msk.f32.mxu0 %vm68_vm0, %v280_v54 }
 0x138   :  { %1554 = vmatmul.mubr.msk.f32.gmra.mrb[22].mxu0 %vm68_vm0, %v281_v20 }
 0x1ef   :  { %v1534_v24 = vpop.f32.mrb[8].mxu0 }
 0x1f0   :  { %v938_v55 = vadd.f32 %v1534_v24, %v1270_v18  ;;  %v851_v56 = vpop.f32.mrb[9].mxu0 }
 0x1f1   :  { %v937_v57 = vadd.f32 %v1270_v18, %v851_v56 }
 0x1f2   :  { %v954_v60 = vmax.f32 %v938_v55, 0.0 }
 0x1f3   :  { %v953_v58 = vmax.f32 %v937_v57, 0.0  ;;  %v1537_v59 = vpop.f32.mrb[10].mxu0 }
 0x1f4   :  { %v940_v22 = vadd.f32 %v1537_v59, %v1270_v18  ;;  %v861_v61 = vpop.f32.mrb[11].mxu0 }
 0x1f5   :  { %v939_v62 = vadd.f32 %v1270_v18, %v861_v61  ;;  %1570 = vmatprep.mubr.msk.f32.mxu1 %vm68_vm0, %v953_v58 }
 0x1f6   :  { %1571 = vmatmul.mubr.msk.f32.vlgmr.msra.gmra.mrb[24].mxu1 %vm68_vm0, %v954_v60  ;;  %v956_v1 = vmax.f32 %v940_v22, 0.0 }
 0x1f7   :  { %v955_v63 = vmax.f32 %v939_v62, 0.0  ;;  %v1540_v0 = vpop.f32.mrb[12].mxu0 }
 0x1f8   :  { %v942_v2 = vadd.f32 %v1540_v0, %v1270_v18  ;;  %v871_v3 = vpop.f32.mrb[13].mxu0 }
 0x1f9   :  { %v941_v4 = vadd.f32 %v1270_v18, %v871_v3  ;;  %1573 = vmatprep.mubr.msk.f32.mxu1 %vm68_vm0, %v955_v63 }
 0x1fa   :  { %1574 = vmatmul.mubr.msk.f32.gmra.mrb[26].mxu1 %vm68_vm0, %v956_v1  ;;  %v958_v7 = vmax.f32 %v942_v2, 0.0 }
 0x1fb   :  { %v957_v5 = vmax.f32 %v941_v4, 0.0  ;;  %v1543_v6 = vpop.f32.mrb[14].mxu0 }
 0x1fc   :  { %v944_v8 = vadd.f32 %v1543_v6, %v1270_v18  ;;  %v881_v9 = vpop.f32.mrb[15].mxu0 }
 0x1fd   :  { %v943_v10 = vadd.f32 %v1270_v18, %v881_v9  ;;  %1576 = vmatprep.mubr.msk.f32.mxu1 %vm68_vm0, %v957_v5 }
 0x1fe   :  { %1577 = vmatmul.mubr.msk.f32.gmra.mrb[28].mxu1 %vm68_vm0, %v958_v7  ;;  %v960_v30 = vmax.f32 %v944_v8, 0.0 }
 0x1ff   :  { %v959_v27 = vmax.f32 %v943_v10, 0.0  ;;  %v1546_v29 = vpop.f32.mrb[16].mxu0 }
 0x200   :  { %v946_v31 = vadd.f32 %v1546_v29, %v1270_v18  ;;  %v891_v32 = vpop.f32.mrb[17].mxu0 }
 0x201   :  { %v945_v33 = vadd.f32 %v1270_v18, %v891_v32  ;;  %1579 = vmatprep.mubr.msk.f32.mxu1 %vm68_vm0, %v959_v27 }
 0x202   :  { %1580 = vmatmul.mubr.msk.f32.gmra.mrb[30].mxu1 %vm68_vm0, %v960_v30  ;;  %v962_v36 = vmax.f32 %v946_v31, 0.0 }
 0x203   :  { %v961_v34 = vmax.f32 %v945_v33, 0.0  ;;  %v1549_v35 = vpop.f32.mrb[18].mxu0 }
 0x204   :  { %v948_v37 = vadd.f32 %v1549_v35, %v1270_v18  ;;  %v901_v38 = vpop.f32.mrb[19].mxu0 }
 0x205   :  { %v947_v39 = vadd.f32 %v1270_v18, %v901_v38  ;;  %1582 = vmatprep.mubr.msk.f32.mxu1 %vm68_vm0, %v961_v34 }
 0x206   :  { %1583 = vmatmul.mubr.msk.f32.gmra.mrb[32].mxu1 %vm68_vm0, %v962_v36  ;;  %v964_v25 = vmax.f32 %v948_v37, 0.0 }
 0x207   :  { %v963_v40 = vmax.f32 %v947_v39, 0.0  ;;  %v1552_v15 = vpop.f32.mrb[20].mxu0 }
 0x208   :  { %v950_v41 = vadd.f32 %v1552_v15, %v1270_v18  ;;  %v911_v42 = vpop.f32.mrb[21].mxu0 }
 0x209   :  { %v949_v43 = vadd.f32 %v1270_v18, %v911_v42  ;;  %1585 = vmatprep.mubr.msk.f32.mxu1 %vm68_vm0, %v963_v40 }
 0x20a   :  { %1586 = vmatmul.mubr.msk.f32.gmra.mrb[34].mxu1 %vm68_vm0, %v964_v25  ;;  %v966_v44 = vmax.f32 %v950_v41, 0.0 }
 0x20b   :  { %v965_v19 = vmax.f32 %v949_v43, 0.0  ;;  %v1555_v13 = vpop.f32.mrb[22].mxu0 }
 0x20c   :  { %v952_v45 = vadd.f32 %v1555_v13, %v1270_v18  ;;  %v921_v46 = vpop.f32.mrb[23].mxu0 }
 0x20d   :  { %v951_v23 = vadd.f32 %v1270_v18, %v921_v46  ;;  %1588 = vmatprep.mubr.msk.f32.mxu1 %vm68_vm0, %v965_v19 }
 0x20e   :  { %1589 = vmatmul.mubr.msk.f32.gmra.mrb[36].mxu1 %vm68_vm0, %v966_v44  ;;  %v968_v47 = vmax.f32 %v952_v45, 0.0 }
 0x20f   :  { %v967_v17 = vmax.f32 %v951_v23, 0.0 }
 0x211   :  { %1591 = vmatprep.mubr.msk.f32.mxu1 %vm68_vm0, %v967_v17 }
 0x212   :  { %1592 = vmatmul.mubr.msk.f32.gmra.mrb[38].mxu1 %vm68_vm0, %v968_v47 }
 0x2c9   :  { %v1572_v48 = vpop.f32.mrb[24].mxu1 }
 0x2ca   :  { %v1106_v21 = vadd.f32 %v1572_v48, %v1271_v28  ;;  %v1100_v49 = vpop.f32.mrb[25].mxu1 }
 0x2cb   :  { %v1101_v50 = vadd.f32 %v1271_v28, %v1100_v49 }
 0x2cc   :  { %1181 = vst.msk [vmem:[%s2184_s11 + $0x8] sm:$0xff] %vm1179_vm2, %v1106_v21 }
 0x2cd   :  { %1180 = vst.msk [vmem:[%s2184_s11] sm:$0xff] %vm1179_vm2, %v1101_v50  ;;  %v1575_v26 = vpop.f32.mrb[26].mxu1 }
 0x2ce   :  { %v1116_v12 = vadd.f32 %v1575_v26, %v1271_v28  ;;  %v1110_v51 = vpop.f32.mrb[27].mxu1 }
 0x2cf   :  { %v1111_v11 = vadd.f32 %v1271_v28, %v1110_v51 }
 0x2d0   :  { %1183 = vst.msk [vmem:[%s2184_s11 + $0x18] sm:$0xff] %vm1179_vm2, %v1116_v12 }
 0x2d1   :  { %1182 = vst.msk [vmem:[%s2184_s11 + $0x10] sm:$0xff] %vm1179_vm2, %v1111_v11  ;;  %v1578_v52 = vpop.f32.mrb[28].mxu1 }
 0x2d2   :  { %v1126_v16 = vadd.f32 %v1578_v52, %v1271_v28  ;;  %v1120_v53 = vpop.f32.mrb[29].mxu1 }
 0x2d3   :  { %v1121_v14 = vadd.f32 %v1271_v28, %v1120_v53 }
 0x2d4   :  { %1185 = vst.msk [vmem:[%s2184_s11 + $0x28] sm:$0xff] %vm1179_vm2, %v1126_v16 }
 0x2d5   :  { %1184 = vst.msk [vmem:[%s2184_s11 + $0x20] sm:$0xff] %vm1179_vm2, %v1121_v14  ;;  %v1581_v54 = vpop.f32.mrb[30].mxu1 }
 0x2d6   :  { %v1136_v20 = vadd.f32 %v1581_v54, %v1271_v28  ;;  %v1130_v18 = vpop.f32.mrb[31].mxu1 }
 0x2d7   :  { %v1131_v24 = vadd.f32 %v1271_v28, %v1130_v18 }
 0x2d8   :  { %1187 = vst.msk [vmem:[%s2184_s11 + $0x38] sm:$0xff] %vm1179_vm2, %v1136_v20 }
 0x2d9   :  { %1186 = vst.msk [vmem:[%s2184_s11 + $0x30] sm:$0xff] %vm1179_vm2, %v1131_v24  ;;  %v1584_v55 = vpop.f32.mrb[32].mxu1 }
 0x2da   :  { %v1146_v56 = vadd.f32 %v1584_v55, %v1271_v28  ;;  %v1140_v57 = vpop.f32.mrb[33].mxu1 }
 0x2db   :  { %v1141_v58 = vadd.f32 %v1271_v28, %v1140_v57 }
 0x2dc   :  { %1189 = vst.msk [vmem:[%s2184_s11 + $0x48] sm:$0xff] %vm1179_vm2, %v1146_v56 }
 0x2dd   :  { %1188 = vst.msk [vmem:[%s2184_s11 + $0x40] sm:$0xff] %vm1179_vm2, %v1141_v58  ;;  %v1587_v59 = vpop.f32.mrb[34].mxu1 }
 0x2de   :  { %v1156_v60 = vadd.f32 %v1587_v59, %v1271_v28  ;;  %v1150_v22 = vpop.f32.mrb[35].mxu1 }
 0x2df   :  { %v1151_v61 = vadd.f32 %v1271_v28, %v1150_v22 }
 0x2e0   :  { %1191 = vst.msk [vmem:[%s2184_s11 + $0x58] sm:$0xff] %vm1179_vm2, %v1156_v60 }
 0x2e1   :  { %1190 = vst.msk [vmem:[%s2184_s11 + $0x50] sm:$0xff] %vm1179_vm2, %v1151_v61  ;;  %v1590_v62 = vpop.f32.mrb[36].mxu1 }
 0x2e2   :  { %v1166_v63 = vadd.f32 %v1590_v62, %v1271_v28  ;;  %v1160_v0 = vpop.f32.mrb[37].mxu1 }
 0x2e3   :  { %v1161_v1 = vadd.f32 %v1271_v28, %v1160_v0 }
 0x2e4   :  { %1193 = vst.msk [vmem:[%s2184_s11 + $0x68] sm:$0xff] %vm1179_vm2, %v1166_v63 }
 0x2e5   :  { %1192 = vst.msk [vmem:[%s2184_s11 + $0x60] sm:$0xff] %vm1179_vm2, %v1161_v1  ;;  %v1593_v2 = vpop.f32.mrb[38].mxu1 }
 0x2e6   :  { %v1176_v3 = vadd.f32 %v1593_v2, %v1271_v28  ;;  %v1170_v4 = vpop.f32.mrb[39].mxu1 }
 0x2e7   :  { %v1171_v5 = vadd.f32 %v1271_v28, %v1170_v4 }
 0x2e8   :  { %1195 = vst.msk [vmem:[%s2184_s11 + $0x78] sm:$0xff] %vm1179_vm2, %v1176_v3 }
 0x2e9   :  { %1194 = vst.msk [vmem:[%s2184_s11 + $0x70] sm:$0xff] %vm1179_vm2, %v1171_v5 }

</bundles_post_ra>
